<compile_context>
chip_gen: v7x
topology: tpu7x:2x2x1
jax: 0.10.0
libtpu: 0.0.40
codegen_flags: <defaults>
</compile_context>

<pallas_src>
import functools

import jax
import jax.numpy as jnp
from jax import lax
from jax.experimental import pallas as pl
from jax.experimental.pallas import tpu as pltpu

BN_EPS = 1e-5

# Tile-size targets for the 1x1-conv matmuls.  Per grid step the working set is
# roughly 2*(tm*tk + tk*tn [+ tm*tn residual]) * bytes + tm*tn*4 (f32 acc)
# ~= 8-12 MiB with the defaults below in bf16 -- inside the 48 MiB scoped limit
# we request and well under physical VMEM on v5e/v6e (128 MiB) and v7x (64 MiB).
TM_TARGET = 1024
TN_TARGET = 512
TK_TARGET = 256

VMEM_LIMIT_BYTES = 48 * 1024 * 1024


# ---------------------------------------------------------------------------
# tile helpers
# ---------------------------------------------------------------------------

def _tile_last(dim, target=TN_TARGET):
    """Tile for a minor-most (lane) dim: multiple of 128 dividing dim, or full."""
    if dim <= target or dim % 128 != 0:
        return dim
    for t in range(target - target % 128, 0, -128):
        if dim % t == 0:
            return t
    return dim


def _tile_second(dim, target=TM_TARGET):
    """Tile for a second-minor (sublane) dim: multiple of 8 dividing dim, or full."""
    if dim <= target or dim % 8 != 0:
        return dim
    for t in range(target - target % 8, 0, -8):
        if dim % t == 0:
            return t
    return dim


# ---------------------------------------------------------------------------
# Pallas kernels
# ---------------------------------------------------------------------------

def _mm_bn_kernel(x_ref, w_ref, s_ref, b_ref, *rest, relu, add_residual):
    """Tiled 1x1-conv matmul + folded BN (+ residual) (+ ReLU).

    Grid: (M tiles, Cout tiles, Cin tiles); K (Cin) is the reduction axis.
    k==0 writes the first partial product directly (no zero-init store+add).
    """
    if add_residual:
        res_ref, o_ref, acc_ref = rest
    else:
        o_ref, acc_ref = rest
    k = pl.program_id(2)

    prod = jnp.dot(x_ref[...].astype(w_ref.dtype), w_ref[...],
                   preferred_element_type=jnp.float32)

    @pl.when(k == 0)
    def _():
        acc_ref[...] = prod

    @pl.when(k > 0)
    def _():
        acc_ref[...] += prod

    @pl.when(k == pl.num_programs(2) - 1)
    def _():
        y = acc_ref[...] * s_ref[...] + b_ref[...]          # f32 epilogue
        if add_residual:
            y = y + res_ref[...].astype(jnp.float32)
        if relu:
            y = jnp.maximum(y, 0.0)
        o_ref[...] = y.astype(o_ref.dtype)


def _conv3x3_bn_relu_pool_kernel(x_ref, w_ref, s_ref, b_ref, o_ref,
                                 xpad_ref, col_ref, *, pool_s):
    """3x3 conv (pad=1) + folded BN + ReLU + fused AvgPool(pool_s).

    Grid: (batch, Cout tiles).
      x_ref   : [1, H, W, C]   one image (resident across Cout tiles)
      w_ref   : [9*C, tn]      weights pre-reshaped (dy, dx, cin) -> 9*C rows
      o_ref   : [Ho*Wo, tn]    lane-dense 2D output block
      xpad_ref: [1, H+2, W+2, C] halo scratch (borders zeroed only)
      col_ref : [H*W, 9*C]     im2col scratch built ONCE per image (j==0)
    For j>0 the cached im2col slab is reused, so each Cout tile is a single
    K=9*C MXU matmul with no re-slicing / relayout work.
    """
    _, h, w, c = x_ref.shape
    tn = w_ref.shape[-1]

    @pl.when(pl.program_id(1) == 0)
    def _():
        # Zero only the four border slabs; the interior is overwritten below.
        zr = jnp.zeros((1, 1, w + 2, c), xpad_ref.dtype)
        zc = jnp.zeros((1, h, 1, c), xpad_ref.dtype)
        xpad_ref[:, 0:1, :, :] = zr
        xpad_ref[:, h + 1:h + 2, :, :] = zr
        xpad_ref[:, 1:h + 1, 0:1, :] = zc
        xpad_ref[:, 1:h + 1, w + 1:w + 2, :] = zc
        xpad_ref[:, 1:h + 1, 1:w + 1, :] = x_ref[...].astype(xpad_ref.dtype)
        # Build the im2col slab (9 shifted patches, each laid out lane-dense).
        for dy in range(3):
            for dx in range(3):
                p = dy * 3 + dx
                col_ref[:, p * c:(p + 1) * c] = (
                    xpad_ref[:, dy:dy + h, dx:dx + w, :].reshape(h * w, c))

    y = jnp.dot(col_ref[...], w_ref[...], preferred_element_type=jnp.float32)
    y = jnp.maximum(y * s_ref[...] + b_ref[...], 0.0)        # BN + ReLU (f32)
    if pool_s > 1:                                           # fused AvgPool
        ho, wo = h // pool_s, w // pool_s
        y = y.reshape(ho, pool_s, wo, pool_s, tn).sum(axis=3).sum(axis=1)
        y = (y * (1.0 / (pool_s * pool_s))).reshape(ho * wo, tn)
    o_ref[...] = y.astype(o_ref.dtype)


def _pool_mm_bn_kernel(x_ref, w_ref, s_ref, b_ref, o_ref, pooled_ref, acc_ref,
                       *, pool_s):
    """Downsample branch: AvgPool(pool_s) fused into a 1x1-conv matmul + folded BN.

    Grid: (batch, Cout tiles, Cin tiles).  Each Cin tile is pooled ONCE during
    the j==0 sweep into a persistent VMEM scratch [nk, Ho*Wo, tk] and reused for
    every Cout tile, so the pooling reduction is O(Cin), not O(Cin*Cout/tn).
    """
    _, h, w, tk = x_ref.shape
    j = pl.program_id(1)
    k = pl.program_id(2)

    @pl.when(j == 0)
    def _():
        x = x_ref[...].astype(jnp.float32)
        if pool_s > 1:
            ho, wo = h // pool_s, w // pool_s
            x = x.reshape(ho, pool_s, wo, pool_s, tk).sum(axis=3).sum(axis=1)
            x = (x * (1.0 / (pool_s * pool_s))).reshape(ho * wo, tk)
        else:
            x = x.reshape(h * w, tk)
        pooled_ref[k] = x.astype(pooled_ref.dtype)

    prod = jnp.dot(pooled_ref[k].astype(w_ref.dtype), w_ref[...],
                   preferred_element_type=jnp.float32)

    @pl.when(k == 0)
    def _():
        acc_ref[...] = prod

    @pl.when(k > 0)
    def _():
        acc_ref[...] += prod

    @pl.when(k == pl.num_programs(2) - 1)
    def _():
        o_ref[...] = (acc_ref[...] * s_ref[...] + b_ref[...]).astype(o_ref.dtype)


# ---------------------------------------------------------------------------
# pallas_call wrappers
# ---------------------------------------------------------------------------

def conv1x1_bn(x2d, w, scale, bias, *, relu, residual2d=None, out_dtype=None):
    """y = [relu]( (x2d @ w) * scale + bias [+ residual] ) with M/Cout/Cin tiling."""
    if out_dtype is None:
        out_dtype = x2d.dtype
    m, cin = x2d.shape
    cout = w.shape[1]
    tm = _tile_second(m, TM_TARGET)
    tk = _tile_last(cin, TK_TARGET)
    tn = _tile_last(cout, TN_TARGET)
    grid = (m // tm, cout // tn, cin // tk)

    in_specs = [
        pl.BlockSpec((tm, tk), lambda i, j, k: (i, k)),
        pl.BlockSpec((tk, tn), lambda i, j, k: (k, j)),
        pl.BlockSpec((1, tn), lambda i, j, k: (0, j)),
        pl.BlockSpec((1, tn), lambda i, j, k: (0, j)),
    ]
    args = [x2d, w, scale, bias]
    if residual2d is not None:
        in_specs.append(pl.BlockSpec((tm, tn), lambda i, j, k: (i, j)))
        args.append(residual2d)

    kernel = functools.partial(_mm_bn_kernel, relu=relu,
                               add_residual=residual2d is not None)
    return pl.pallas_call(
        kernel,
        grid=grid,
        in_specs=in_specs,
        out_specs=pl.BlockSpec((tm, tn), lambda i, j, k: (i, j)),
        out_shape=jax.ShapeDtypeStruct((m, cout), out_dtype),
        scratch_shapes=[pltpu.VMEM((tm, tn), jnp.float32)],
        compiler_params=pltpu.CompilerParams(
            dimension_semantics=("parallel", "parallel", "arbitrary"),
            vmem_limit_bytes=VMEM_LIMIT_BYTES),
    )(*args)


def conv3x3_bn_relu_pool(x_nhwc, w_flat, scale, bias, pool_s, out_dtype=None):
    """3x3 conv + BN + ReLU + AvgPool(pool_s); returns lane-dense [N*Ho*Wo, Cout].

    w_flat is the pre-reshaped weight of shape [9*Cin, Cout] (dy, dx, cin order).
    """
    # TODO(synk): add a row-strip grid axis (with 1-row halo) so (Ho*Wo) need not
    # be 8-aligned for batch>1 (CLIP 7x7 stages) and v7x megacore gets a parallel
    # axis at batch==1; the whole-image-per-step form below is kept for robustness.
    n, h, w, c = x_nhwc.shape
    k9, cout = w_flat.shape
    assert k9 == 9 * c
    if out_dtype is None:
        out_dtype = x_nhwc.dtype
    assert h % pool_s == 0 and w % pool_s == 0
    ho, wo = h // pool_s, w // pool_s
    assert (ho * wo) % 8 == 0 or n == 1
    tn = _tile_last(cout, TN_TARGET)
    grid = (n, cout // tn)

    kernel = functools.partial(_conv3x3_bn_relu_pool_kernel, pool_s=pool_s)
    return pl.pallas_call(
        kernel,
        grid=grid,
        in_specs=[
            pl.BlockSpec((1, h, w, c), lambda b, j: (b, 0, 0, 0)),
            pl.BlockSpec((9 * c, tn), lambda b, j: (0, j)),
            pl.BlockSpec((1, tn), lambda b, j: (0, j)),
            pl.BlockSpec((1, tn), lambda b, j: (0, j)),
        ],
        out_specs=pl.BlockSpec((ho * wo, tn), lambda b, j: (b, j)),
        out_shape=jax.ShapeDtypeStruct((n * ho * wo, cout), out_dtype),
        # Halo + im2col scratch stay in the activation/compute dtype (bf16 on the
        # bf16 path) so the cast happens once per image, not per patch per tile.
        scratch_shapes=[pltpu.VMEM((1, h + 2, w + 2, c), x_nhwc.dtype),
                        pltpu.VMEM((h * w, 9 * c), x_nhwc.dtype)],
        # j must stay "arbitrary": the halo/im2col scratch filled at j==0 is reused
        # by the following j steps on the same core.  batch is "parallel" for megacore.
        compiler_params=pltpu.CompilerParams(
            dimension_semantics=("parallel", "arbitrary"),
            vmem_limit_bytes=VMEM_LIMIT_BYTES),
    )(x_nhwc, w_flat, scale, bias)


def downsample_pool_conv_bn(x_nhwc, w, scale, bias, pool_s, out_dtype=None):
    """AvgPool(pool_s) -> 1x1 conv -> BN, fused; returns [N*Ho*Wo, Cout]."""
    n, h, ww, cin = x_nhwc.shape
    cout = w.shape[1]
    if out_dtype is None:
        out_dtype = x_nhwc.dtype
    assert h % pool_s == 0 and ww % pool_s == 0
    ho, wo = h // pool_s, ww // pool_s
    assert (ho * wo) % 8 == 0 or n == 1
    tn = _tile_last(cout, TN_TARGET)
    tk = _tile_last(cin, TK_TARGET)
    nk = cin // tk
    grid = (n, cout // tn, nk)

    kernel = functools.partial(_pool_mm_bn_kernel, pool_s=pool_s)
    return pl.pallas_call(
        kernel,
        grid=grid,
        in_specs=[
            pl.BlockSpec((1, h, ww, tk), lambda b, j, k: (b, 0, 0, k)),
            pl.BlockSpec((tk, tn), lambda b, j, k: (k, j)),
            pl.BlockSpec((1, tn), lambda b, j, k: (0, j)),
            pl.BlockSpec((1, tn), lambda b, j, k: (0, j)),
        ],
        out_specs=pl.BlockSpec((ho * wo, tn), lambda b, j, k: (b, j)),
        out_shape=jax.ShapeDtypeStruct((n * ho * wo, cout), out_dtype),
        scratch_shapes=[pltpu.VMEM((nk, ho * wo, tk), x_nhwc.dtype),
                        pltpu.VMEM((ho * wo, tn), jnp.float32)],
        # j must stay "arbitrary": pooled scratch filled at j==0 is reused for j>0.
        compiler_params=pltpu.CompilerParams(
            dimension_semantics=("parallel", "arbitrary", "arbitrary"),
            vmem_limit_bytes=VMEM_LIMIT_BYTES),
    )(x_nhwc, w, scale, bias)


# ---------------------------------------------------------------------------
# parameters: init (PyTorch layout) and one-time Pallas preparation
# ---------------------------------------------------------------------------

def _fold_bn(gamma, beta, mean, var):
    scale = gamma / jnp.sqrt(var + BN_EPS)
    bias = beta - mean * scale
    return (scale.reshape(1, -1).astype(jnp.float32),
            bias.reshape(1, -1).astype(jnp.float32))


def init_bottleneck_params(key, inplanes, planes, stride):
    expansion = 4
    keys = jax.random.split(key, 8)

    def conv_w(k, cout, cin, kh, kw):
        return 0.1 * jax.random.normal(k, (cout, cin, kh, kw), jnp.float32)

    def bn(k, c):
        k1, k2, k3, k4 = jax.random.split(k, 4)
        gamma = 1.0 + 0.1 * jax.random.normal(k1, (c,), jnp.float32)
        beta = 0.1 * jax.random.normal(k2, (c,), jnp.float32)
        mean = 0.1 * jax.random.normal(k3, (c,), jnp.float32)
        var = jnp.abs(jax.random.normal(k4, (c,), jnp.float32)) + 0.5
        return gamma, beta, mean, var

    p = {
        "conv1": conv_w(keys[0], planes, inplanes, 1, 1),
        "bn1": bn(keys[1], planes),
        "conv2": conv_w(keys[2], planes, planes, 3, 3),
        "bn2": bn(keys[3], planes),
        "conv3": conv_w(keys[4], planes * expansion, planes, 1, 1),
        "bn3": bn(keys[5], planes * expansion),
        "stride": stride,
    }
    if stride > 1 or inplanes != planes * expansion:
        p["down_conv"] = conv_w(keys[6], planes * expansion, inplanes, 1, 1)
        p["down_bn"] = bn(keys[7], planes * expansion)
    return p


def prepare_pallas_params(p, compute_dtype=jnp.bfloat16):
    """Fold BN, transpose/reshape weights, and fix the compute dtype ONCE.

    Default compute_dtype=bf16 runs the MXU on its fast path (v6e/v7x) and halves
    inter-kernel activation HBM traffic; accumulation and BN/residual/ReLU
    epilogues stay f32.  Pass jnp.float32 for a bit-tighter numerical check.
    """
    planes = p["conv1"].shape[0]
    cout2 = p["conv2"].shape[0]
    pp = {"stride": int(p["stride"]), "compute_dtype": compute_dtype}
    pp["w1"] = p["conv1"][:, :, 0, 0].T.astype(compute_dtype)            # [Cin, planes]
    pp["s1"], pp["b1"] = _fold_bn(*p["bn1"])
    # conv2: OIHW -> (dy, dx, Cin, Cout) -> [9*Cin, Cout] (matches im2col layout)
    pp["w2"] = (jnp.transpose(p["conv2"], (2, 3, 1, 0))
                .reshape(9 * planes, cout2).astype(compute_dtype))
    pp["s2"], pp["b2"] = _fold_bn(*p["bn2"])
    pp["w3"] = p["conv3"][:, :, 0, 0].T.astype(compute_dtype)            # [planes, 4*planes]
    pp["s3"], pp["b3"] = _fold_bn(*p["bn3"])
    if "down_conv" in p:
        pp["wd"] = p["down_conv"][:, :, 0, 0].T.astype(compute_dtype)
        pp["sd"], pp["bd"] = _fold_bn(*p["down_bn"])
    return pp


# ---------------------------------------------------------------------------
# Bottleneck forward (Pallas path)
# ---------------------------------------------------------------------------

def bottleneck_forward_pallas_nhwc(x_nhwc, pp, out_dtype=None):
    """NHWC-in / NHWC-out forward.  Keep activations NHWC across stacked blocks."""
    stride = pp["stride"]
    cd = pp["compute_dtype"]
    n, h, w, cin = x_nhwc.shape
    if out_dtype is None:
        out_dtype = x_nhwc.dtype
    x = x_nhwc.astype(cd)                     # no-op when the caller feeds cd already
    m = n * h * w
    planes = pp["w1"].shape[1]
    cout = pp["w3"].shape[1]
    ho, wo = h // stride, w // stride
    mo = n * ho * wo

    # conv1 (1x1) + bn1 + relu                                    -> [M, planes]
    h1 = conv1x1_bn(x.reshape(m, cin), pp["w1"], pp["s1"], pp["b1"], relu=True)
    h1 = h1.reshape(n, h, w, planes)

    # conv2 (3x3, pad=1) + bn2 + relu + fused avgpool(stride)     -> [Mo, planes]
    h2 = conv3x3_bn_relu_pool(h1, pp["w2"], pp["s2"], pp["b2"], stride)

    # identity / downsample branch                                -> [Mo, 4*planes]
    if "wd" in pp:
        if stride > 1:
            identity = downsample_pool_conv_bn(x, pp["wd"], pp["sd"], pp["bd"], stride)
        else:
            identity = conv1x1_bn(x.reshape(m, cin), pp["wd"], pp["sd"], pp["bd"],
                                  relu=False)
        identity = identity.reshape(mo, cout)
    else:
        identity = x.reshape(mo, cout)

    # conv3 (1x1) + bn3 + residual add + relu, fused in one kernel
    out = conv1x1_bn(h2, pp["w3"], pp["s3"], pp["b3"], relu=True,
                     residual2d=identity, out_dtype=out_dtype)
    return out.reshape(n, ho, wo, cout)


def bottleneck_forward_pallas(x_nchw, pp):
    """PyTorch-layout (NCHW) wrapper; layout changes only at the model boundary."""
    x_nhwc = jnp.transpose(x_nchw, (0, 2, 3, 1))
    out = bottleneck_forward_pallas_nhwc(x_nhwc, pp, out_dtype=x_nchw.dtype)
    return jnp.transpose(out, (0, 3, 1, 2))


# ---------------------------------------------------------------------------
# Pure-JAX reference (matches PyTorch eval-mode forward)
# ---------------------------------------------------------------------------

def _ref_bn(x_nchw, bn_params):
    gamma, beta, mean, var = bn_params
    shp = (1, -1, 1, 1)
    return (x_nchw - mean.reshape(shp)) / jnp.sqrt(var.reshape(shp) + BN_EPS) \
        * gamma.reshape(shp) + beta.reshape(shp)


def _ref_conv(x_nchw, w_oihw, padding):
    return lax.conv_general_dilated(
        x_nchw, w_oihw, window_strides=(1, 1), padding=padding,
        dimension_numbers=("NCHW", "OIHW", "NCHW"))


def _ref_avgpool(x_nchw, s):
    if s <= 1:
        return x_nchw
    n, c, h, w = x_nchw.shape
    return x_nchw.reshape(n, c, h // s, s, w // s, s).mean(axis=(3, 5))


def bottleneck_forward_ref(x, p):
    stride = p["stride"]
    out = jax.nn.relu(_ref_bn(_ref_conv(x, p["conv1"], "VALID"), p["bn1"]))
    out = jax.nn.relu(_ref_bn(_ref_conv(out, p["conv2"], ((1, 1), (1, 1))), p["bn2"]))
    out = _ref_avgpool(out, stride)
    out = _ref_bn(_ref_conv(out, p["conv3"], "VALID"), p["bn3"])
    if "down_conv" in p:
        identity = _ref_avgpool(x, stride)
        identity = _ref_bn(_ref_conv(identity, p["down_conv"], "VALID"), p["down_bn"])
    else:
        identity = x
    return jax.nn.relu(out + identity)


# ---------------------------------------------------------------------------

if __name__ == "__main__":
    key = jax.random.PRNGKey(0)
    k1, k2, k3, k4 = jax.random.split(key, 4)

    # Case 1: stride=2 -> fused avgpool + downsample branch exercised.
    N, inplanes, planes, H, W, stride = 2, 16, 8, 16, 16, 2
    x = jax.random.normal(k1, (N, inplanes, H, W), jnp.float32)   # NCHW like PyTorch
    params = init_bottleneck_params(k2, inplanes, planes, stride)
    ref = jax.block_until_ready(bottleneck_forward_ref(x, params))

    pp_f32 = prepare_pallas_params(params, compute_dtype=jnp.float32)
    out_f32 = jax.block_until_ready(bottleneck_forward_pallas(x, pp_f32))
    assert out_f32.shape == (N, planes * 4, H // stride, W // stride), out_f32.shape
    assert jnp.allclose(out_f32, ref, rtol=1e-2, atol=1e-2), \
        float(jnp.max(jnp.abs(out_f32 - ref)))

    pp_bf16 = prepare_pallas_params(params, compute_dtype=jnp.bfloat16)
    out_bf16 = jax.block_until_ready(bottleneck_forward_pallas(x, pp_bf16))
    assert out_bf16.shape == ref.shape
    assert jnp.allclose(out_bf16, ref, rtol=3e-2, atol=3e-2), \
        float(jnp.max(jnp.abs(out_bf16 - ref)))

    # Case 2: stride=1, inplanes == 4*planes -> pure identity shortcut.
    N, inplanes, planes, H, W, stride = 2, 32, 8, 16, 16, 1
    x = jax.random.normal(k3, (N, inplanes, H, W), jnp.float32)
    params = init_bottleneck_params(k4, inplanes, planes, stride)
    ref = jax.block_until_ready(bottleneck_forward_ref(x, params))

    pp_f32 = prepare_pallas_params(params, compute_dtype=jnp.float32)
    out_f32 = jax.block_until_ready(bottleneck_forward_pallas(x, pp_f32))
    assert out_f32.shape == (N, planes * 4, H, W), out_f32.shape
    assert jnp.allclose(out_f32, ref, rtol=1e-2, atol=1e-2), \
        float(jnp.max(jnp.abs(out_f32 - ref)))

    pp_bf16 = prepare_pallas_params(params, compute_dtype=jnp.bfloat16)
    out_bf16 = jax.block_until_ready(bottleneck_forward_pallas(x, pp_bf16))
    assert out_bf16.shape == ref.shape
    assert jnp.allclose(out_bf16, ref, rtol=3e-2, atol=3e-2), \
        float(jnp.max(jnp.abs(out_bf16 - ref)))

    print("KERNEL_OK")
</pallas_src>

<mosaic_0001>
module attributes {stable_mosaic.version = 11 : i64} {
  func.func @_mm_bn_kernel(%arg0: i32, %arg1: i32, %arg2: i32, %arg3: memref<512x16xf32, #tpu.memory_space<vmem>>, %arg4: memref<16x8xf32, #tpu.memory_space<vmem>>, %arg5: memref<1x8xf32, #tpu.memory_space<vmem>>, %arg6: memref<1x8xf32, #tpu.memory_space<vmem>>, %arg7: memref<512x8xf32, #tpu.memory_space<vmem>>, %arg8: memref<512x8xf32, #tpu.memory_space<vmem>>) attributes {dimension_semantics = [#tpu.dimension_semantics<parallel>, #tpu.dimension_semantics<parallel>, #tpu.dimension_semantics<arbitrary>], iteration_bounds = array<i64: 1, 1, 1>, scalar_prefetch = 0 : i64, scratch_operands = 1 : i64, tpu.core_type = #tpu.core_type<tc>, window_params = [{transform_indices = @transform_0, window_bounds = array<i64: 512, 16>}, {transform_indices = @transform_1, window_bounds = array<i64: 16, 8>}, {transform_indices = @transform_2, window_bounds = array<i64: 1, 8>}, {transform_indices = @transform_3, window_bounds = array<i64: 1, 8>}, {transform_indices = @transform_4, window_bounds = array<i64: 512, 8>}]} {
    %c0 = arith.constant 0 : index
    %c0_0 = arith.constant 0 : index
    %0 = vector.load %arg3[%c0, %c0_0] : memref<512x16xf32, #tpu.memory_space<vmem>>, vector<512x16xf32>
    %c0_1 = arith.constant 0 : index
    %c0_2 = arith.constant 0 : index
    %1 = vector.load %arg4[%c0_1, %c0_2] : memref<16x8xf32, #tpu.memory_space<vmem>>, vector<16x8xf32>
    %cst = arith.constant dense<0.000000e+00> : vector<512x8xf32>
    %2 = tpu.matmul %0, %1, %cst {dimension_numbers = #tpu.dot_dimension_numbers<[1], [0], [0], [1], [0, 0, 1, 1], [], []>} : vector<512x16xf32>, vector<16x8xf32>, vector<512x8xf32> -> vector<512x8xf32>
    %c0_i32 = arith.constant 0 : i32
    %3 = arith.cmpi eq, %arg2, %c0_i32 : i32
    %4 = arith.extui %3 : i1 to i32
    %c0_i32_3 = arith.constant 0 : i32
    %5 = arith.cmpi ne, %4, %c0_i32_3 : i32
    scf.if %5 {
      %c0_8 = arith.constant 0 : index
      %c0_9 = arith.constant 0 : index
      %12 = vector.load %arg8[%c0_8, %c0_9] : memref<512x8xf32, #tpu.memory_space<vmem>>, vector<512x8xf32>
      tpu.vector_store %arg8[%c0_8, %c0_9], %2 {strides = array<i32>} : memref<512x8xf32, #tpu.memory_space<vmem>>, vector<512x8xf32>,
    } else {
    }
    %c0_i32_4 = arith.constant 0 : i32
    %6 = arith.cmpi sgt, %arg2, %c0_i32_4 : i32
    %7 = arith.extui %6 : i1 to i32
    %c0_i32_5 = arith.constant 0 : i32
    %8 = arith.cmpi ne, %7, %c0_i32_5 : i32
    scf.if %8 {
      %c0_8 = arith.constant 0 : index
      %c0_9 = arith.constant 0 : index
      %12 = vector.load %arg8[%c0_8, %c0_9] : memref<512x8xf32, #tpu.memory_space<vmem>>, vector<512x8xf32>
      %13 = arith.addf %12, %2 : vector<512x8xf32>
      %c0_10 = arith.constant 0 : index
      %c0_11 = arith.constant 0 : index
      %14 = vector.load %arg8[%c0_10, %c0_11] : memref<512x8xf32, #tpu.memory_space<vmem>>, vector<512x8xf32>
      tpu.vector_store %arg8[%c0_10, %c0_11], %13 {strides = array<i32>} : memref<512x8xf32, #tpu.memory_space<vmem>>, vector<512x8xf32>,
    } else {
    }
    %c0_i32_6 = arith.constant 0 : i32
    %9 = arith.cmpi eq, %arg2, %c0_i32_6 : i32
    %10 = arith.extui %9 : i1 to i32
    %c0_i32_7 = arith.constant 0 : i32
    %11 = arith.cmpi ne, %10, %c0_i32_7 : i32
    scf.if %11 {
      %c0_8 = arith.constant 0 : index
      %c0_9 = arith.constant 0 : index
      %12 = vector.load %arg8[%c0_8, %c0_9] : memref<512x8xf32, #tpu.memory_space<vmem>>, vector<512x8xf32>
      %c0_10 = arith.constant 0 : index
      %c0_11 = arith.constant 0 : index
      %13 = vector.load %arg5[%c0_10, %c0_11] : memref<1x8xf32, #tpu.memory_space<vmem>>, vector<1x8xf32>
      %14 = vector.broadcast %13 : vector<1x8xf32> to vector<512x8xf32>
      %15 = arith.mulf %12, %14 : vector<512x8xf32>
      %c0_12 = arith.constant 0 : index
      %c0_13 = arith.constant 0 : index
      %16 = vector.load %arg6[%c0_12, %c0_13] : memref<1x8xf32, #tpu.memory_space<vmem>>, vector<1x8xf32>
      %17 = vector.broadcast %16 : vector<1x8xf32> to vector<512x8xf32>
      %18 = arith.addf %15, %17 : vector<512x8xf32>
      %cst_14 = arith.constant 0.000000e+00 : f32
      %19 = vector.broadcast %cst_14 : f32 to vector<512x8xf32>
      %20 = arith.maximumf %18, %19 : vector<512x8xf32>
      %c0_15 = arith.constant 0 : index
      %c0_16 = arith.constant 0 : index
      %21 = vector.load %arg7[%c0_15, %c0_16] : memref<512x8xf32, #tpu.memory_space<vmem>>, vector<512x8xf32>
      tpu.vector_store %arg7[%c0_15, %c0_16], %20 {strides = array<i32>} : memref<512x8xf32, #tpu.memory_space<vmem>>, vector<512x8xf32>,
    } else {
    }
    return
  }
  func.func @transform_0(%arg0: i32, %arg1: i32, %arg2: i32) -> (i32, i32) {
    %c0_i32 = arith.constant 0 : i32
    return %arg0, %arg2 : i32, i32
  }
  func.func @transform_1(%arg0: i32, %arg1: i32, %arg2: i32) -> (i32, i32) {
    %c0_i32 = arith.constant 0 : i32
    return %arg2, %arg1 : i32, i32
  }
  func.func @transform_2(%arg0: i32, %arg1: i32, %arg2: i32) -> (i32, i32) {
    %c0_i32 = arith.constant 0 : i32
    %c0_i32_0 = arith.constant 0 : i32
    return %c0_i32, %arg1 : i32, i32
  }
  func.func @transform_3(%arg0: i32, %arg1: i32, %arg2: i32) -> (i32, i32) {
    %c0_i32 = arith.constant 0 : i32
    %c0_i32_0 = arith.constant 0 : i32
    return %c0_i32, %arg1 : i32, i32
  }
  func.func @transform_4(%arg0: i32, %arg1: i32, %arg2: i32) -> (i32, i32) {
    %c0_i32 = arith.constant 0 : i32
    return %arg0, %arg1 : i32, i32
  }
}

</mosaic_0001>

<bundles_post_ra>
// kernel: tpu_custom_call.1
= control target key start
LH: loop header
LB: loop body
LE: loop exit
PB: predicated region body
PF: predicated region fallthrough
CT: control target
= control target key end

     0   :  { %vm83_vm0 = vcmask 130048   ;;  %vm665_vm1 = vcmask 64512   ;;  %s2252_s1 = inlined_call_operand.vmem [shape: f32[16,8], index: 1, kind: input, shape index: {}]   ;;  %s2253_s0 = inlined_call_operand.vmem [shape: f32[512,16], index: 0, kind: input, shape index: {}]   ;;  %s2254_s2 = inlined_call_operand.vmem [shape: f32[1,8], index: 2, kind: input, shape index: {}]   ;;  %s2255_s3 = inlined_call_operand.vmem [shape: f32[1,8], index: 3, kind: input, shape index: {}]   ;;  %s2256_s4 = inlined_call_operand.vmem [shape: f32[512,8], index: 4, kind: output, shape index: {}]  }
   0x1   :  { %v81_v0 = vld [vmem:[%s2252_s1] sm:$0xff]  ;;  %v82_v1 = vld [vmem:[%s2252_s1 + $0x8] sm:$0xff]  ;;  %v19_v7 = vld [vmem:[%s2253_s0 + $0x10] sm:$0xff] }
   0x2   :  { %v17_v2 = vld [vmem:[%s2253_s0] sm:$0xff]  ;;  %v1501_v3 = vpack.c.bf16 %v82_v1, %v81_v0  ;;  %v18_v5 = vld [vmem:[%s2253_s0 + $0x8] sm:$0xff]  ;;  %v51_v8 = vld [vmem:[%s2253_s0 + $0x110] sm:$0xff] }
   0x3   :  { %1405 = vmatprep.mubr.msk.f32.mxu0 %vm83_vm0, %v17_v2  ;;  %v49_v4 = vld [vmem:[%s2253_s0 + $0x100] sm:$0xff]  ;;  %v50_v6 = vld [vmem:[%s2253_s0 + $0x108] sm:$0xff]  ;;  %v20_v9 = vld [vmem:[%s2253_s0 + $0x18] sm:$0xff] }
   0x4   :  { %1453 = vmatprep.mubr.msk.f32.mxu1 %vm83_vm0, %v49_v4  ;;  %1502 = vmatprep.subr.bf16.mxu0 %v1501_v3  ;;  %v52_v10 = vld [vmem:[%s2253_s0 + $0x118] sm:$0xff]  ;;  %v21_v11 = vld [vmem:[%s2253_s0 + $0x20] sm:$0xff]  ;;  %v22_v13 = vld [vmem:[%s2253_s0 + $0x28] sm:$0xff] }
   0x5   :  { %1505 = vmatprep.subr.bf16.mxu1 %v1501_v3  ;;  %1504 = vmatpush3.bf16.msra.mxu0 %v1501_v3  ;;  %v53_v12 = vld [vmem:[%s2253_s0 + $0x120] sm:$0xff]  ;;  %v54_v14 = vld [vmem:[%s2253_s0 + $0x128] sm:$0xff]  ;;  %v23_v15 = vld [vmem:[%s2253_s0 + $0x30] sm:$0xff] }
   0x6   :  { %1506 = vmatpush3.bf16.msra.mxu1 %v1501_v3  ;;  %v55_v16 = vld [vmem:[%s2253_s0 + $0x130] sm:$0xff]  ;;  %v24_v17 = vld [vmem:[%s2253_s0 + $0x38] sm:$0xff]  ;;  %v25_v19 = vld [vmem:[%s2253_s0 + $0x40] sm:$0xff] }
   0x7   :  { %v56_v18 = vld [vmem:[%s2253_s0 + $0x138] sm:$0xff]  ;;  %v57_v20 = vld [vmem:[%s2253_s0 + $0x140] sm:$0xff]  ;;  %v26_v21 = vld [vmem:[%s2253_s0 + $0x48] sm:$0xff] }
   0x8   :  { %1406 = vmatmul.mubr.msk.f32.vlgmr.msra.gmra.mrb[0].mxu0 %vm83_vm0, %v18_v5  ;;  %v58_v22 = vld [vmem:[%s2253_s0 + $0x148] sm:$0xff]  ;;  %v27_v23 = vld [vmem:[%s2253_s0 + $0x50] sm:$0xff]  ;;  %v28_v25 = vld [vmem:[%s2253_s0 + $0x58] sm:$0xff] }
   0x9   :  { %1454 = vmatmul.mubr.msk.f32.vlgmr.msra.gmra.mrb[0].mxu1 %vm83_vm0, %v50_v6  ;;  %1408 = vmatprep.mubr.msk.f32.mxu0 %vm83_vm0, %v19_v7  ;;  %v59_v24 = vld [vmem:[%s2253_s0 + $0x150] sm:$0xff]  ;;  %v60_v26 = vld [vmem:[%s2253_s0 + $0x158] sm:$0xff]  ;;  %v29_v27 = vld [vmem:[%s2253_s0 + $0x60] sm:$0xff] }
   0xa   :  { %1456 = vmatprep.mubr.msk.f32.mxu1 %vm83_vm0, %v51_v8  ;;  %v61_v28 = vld [vmem:[%s2253_s0 + $0x160] sm:$0xff]  ;;  %v30_v29 = vld [vmem:[%s2253_s0 + $0x68] sm:$0xff]  ;;  %v31_v31 = vld [vmem:[%s2253_s0 + $0x70] sm:$0xff] }
   0xb   :  { %v62_v30 = vld [vmem:[%s2253_s0 + $0x168] sm:$0xff]  ;;  %v63_v32 = vld [vmem:[%s2253_s0 + $0x170] sm:$0xff]  ;;  %v32_v33 = vld [vmem:[%s2253_s0 + $0x78] sm:$0xff] }
   0xc   :  { %1409 = vmatmul.mubr.msk.f32.gmra.mrb[2].mxu0 %vm83_vm0, %v20_v9  ;;  %v64_v34 = vld [vmem:[%s2253_s0 + $0x178] sm:$0xff]  ;;  %v33_v35 = vld [vmem:[%s2253_s0 + $0x80] sm:$0xff]  ;;  %v34_v37 = vld [vmem:[%s2253_s0 + $0x88] sm:$0xff] }
   0xd   :  { %1457 = vmatmul.mubr.msk.f32.gmra.mrb[2].mxu1 %vm83_vm0, %v52_v10  ;;  %1411 = vmatprep.mubr.msk.f32.mxu0 %vm83_vm0, %v21_v11  ;;  %v65_v36 = vld [vmem:[%s2253_s0 + $0x180] sm:$0xff]  ;;  %v66_v38 = vld [vmem:[%s2253_s0 + $0x188] sm:$0xff]  ;;  %v35_v39 = vld [vmem:[%s2253_s0 + $0x90] sm:$0xff] }
   0xe   :  { %1459 = vmatprep.mubr.msk.f32.mxu1 %vm83_vm0, %v53_v12  ;;  %v67_v40 = vld [vmem:[%s2253_s0 + $0x190] sm:$0xff]  ;;  %v36_v41 = vld [vmem:[%s2253_s0 + $0x98] sm:$0xff]  ;;  %v37_v43 = vld [vmem:[%s2253_s0 + $0xa0] sm:$0xff] }
   0xf   :  { %v68_v42 = vld [vmem:[%s2253_s0 + $0x198] sm:$0xff]  ;;  %v69_v44 = vld [vmem:[%s2253_s0 + $0x1a0] sm:$0xff]  ;;  %v38_v45 = vld [vmem:[%s2253_s0 + $0xa8] sm:$0xff] }
  0x10   :  { %1412 = vmatmul.mubr.msk.f32.gmra.mrb[4].mxu0 %vm83_vm0, %v22_v13  ;;  %v70_v46 = vld [vmem:[%s2253_s0 + $0x1a8] sm:$0xff]  ;;  %v39_v47 = vld [vmem:[%s2253_s0 + $0xb0] sm:$0xff]  ;;  %v40_v49 = vld [vmem:[%s2253_s0 + $0xb8] sm:$0xff] }
  0x11   :  { %1460 = vmatmul.mubr.msk.f32.gmra.mrb[4].mxu1 %vm83_vm0, %v54_v14  ;;  %1414 = vmatprep.mubr.msk.f32.mxu0 %vm83_vm0, %v23_v15  ;;  %v71_v48 = vld [vmem:[%s2253_s0 + $0x1b0] sm:$0xff]  ;;  %v72_v50 = vld [vmem:[%s2253_s0 + $0x1b8] sm:$0xff]  ;;  %v41_v51 = vld [vmem:[%s2253_s0 + $0xc0] sm:$0xff] }
  0x12   :  { %1462 = vmatprep.mubr.msk.f32.mxu1 %vm83_vm0, %v55_v16  ;;  %v73_v52 = vld [vmem:[%s2253_s0 + $0x1c0] sm:$0xff]  ;;  %v42_v53 = vld [vmem:[%s2253_s0 + $0xc8] sm:$0xff]  ;;  %v43_v55 = vld [vmem:[%s2253_s0 + $0xd0] sm:$0xff] }
  0x13   :  { %v74_v54 = vld [vmem:[%s2253_s0 + $0x1c8] sm:$0xff]  ;;  %v75_v56 = vld [vmem:[%s2253_s0 + $0x1d0] sm:$0xff]  ;;  %v44_v57 = vld [vmem:[%s2253_s0 + $0xd8] sm:$0xff] }
  0x14   :  { %1415 = vmatmul.mubr.msk.f32.gmra.mrb[6].mxu0 %vm83_vm0, %v24_v17  ;;  %v76_v58 = vld [vmem:[%s2253_s0 + $0x1d8] sm:$0xff]  ;;  %v45_v59 = vld [vmem:[%s2253_s0 + $0xe0] sm:$0xff]  ;;  %v46_v61 = vld [vmem:[%s2253_s0 + $0xe8] sm:$0xff] }
  0x15   :  { %1463 = vmatmul.mubr.msk.f32.gmra.mrb[6].mxu1 %vm83_vm0, %v56_v18  ;;  %1417 = vmatprep.mubr.msk.f32.mxu0 %vm83_vm0, %v25_v19  ;;  %v77_v60 = vld [vmem:[%s2253_s0 + $0x1e0] sm:$0xff]  ;;  %v78_v62 = vld [vmem:[%s2253_s0 + $0x1e8] sm:$0xff]  ;;  %v47_v63 = vld [vmem:[%s2253_s0 + $0xf0] sm:$0xff] }
  0x16   :  { %1465 = vmatprep.mubr.msk.f32.mxu1 %vm83_vm0, %v57_v20  ;;  %v79_v0 = vld [vmem:[%s2253_s0 + $0x1f0] sm:$0xff]  ;;  %v48_v1 = vld [vmem:[%s2253_s0 + $0xf8] sm:$0xff]  ;;  %v1803_v11 = vld [vmem:[%s2254_s2] ss:$0 sm:$0xff] }
  0x17   :  { %v80_v2 = vld [vmem:[%s2253_s0 + $0x1f8] sm:$0xff]  ;;  %v1810_v13 = vld [vmem:[%s2255_s3] ss:$0 sm:$0xff] }
  0x18   :  { %1418 = vmatmul.mubr.msk.f32.gmra.mrb[8].mxu0 %vm83_vm0, %v26_v21 }
  0x19   :  { %1466 = vmatmul.mubr.msk.f32.gmra.mrb[8].mxu1 %vm83_vm0, %v58_v22  ;;  %1420 = vmatprep.mubr.msk.f32.mxu0 %vm83_vm0, %v27_v23 }
  0x1a   :  { %1468 = vmatprep.mubr.msk.f32.mxu1 %vm83_vm0, %v59_v24 }
  0x1c   :  { %1421 = vmatmul.mubr.msk.f32.gmra.mrb[10].mxu0 %vm83_vm0, %v28_v25 }
  0x1d   :  { %1469 = vmatmul.mubr.msk.f32.gmra.mrb[10].mxu1 %vm83_vm0, %v60_v26  ;;  %1423 = vmatprep.mubr.msk.f32.mxu0 %vm83_vm0, %v29_v27 }
  0x1e   :  { %1471 = vmatprep.mubr.msk.f32.mxu1 %vm83_vm0, %v61_v28 }
  0x20   :  { %1424 = vmatmul.mubr.msk.f32.gmra.mrb[12].mxu0 %vm83_vm0, %v30_v29 }
  0x21   :  { %1472 = vmatmul.mubr.msk.f32.gmra.mrb[12].mxu1 %vm83_vm0, %v62_v30  ;;  %1426 = vmatprep.mubr.msk.f32.mxu0 %vm83_vm0, %v31_v31 }
  0x22   :  { %1474 = vmatprep.mubr.msk.f32.mxu1 %vm83_vm0, %v63_v32 }
  0x24   :  { %1427 = vmatmul.mubr.msk.f32.gmra.mrb[14].mxu0 %vm83_vm0, %v32_v33 }
  0x25   :  { %1475 = vmatmul.mubr.msk.f32.gmra.mrb[14].mxu1 %vm83_vm0, %v64_v34  ;;  %1429 = vmatprep.mubr.msk.f32.mxu0 %vm83_vm0, %v33_v35 }
  0x26   :  { %1477 = vmatprep.mubr.msk.f32.mxu1 %vm83_vm0, %v65_v36 }
  0x28   :  { %1430 = vmatmul.mubr.msk.f32.gmra.mrb[16].mxu0 %vm83_vm0, %v34_v37 }
  0x29   :  { %1478 = vmatmul.mubr.msk.f32.gmra.mrb[16].mxu1 %vm83_vm0, %v66_v38  ;;  %1432 = vmatprep.mubr.msk.f32.mxu0 %vm83_vm0, %v35_v39 }
  0x2a   :  { %1480 = vmatprep.mubr.msk.f32.mxu1 %vm83_vm0, %v67_v40 }
  0x2c   :  { %1433 = vmatmul.mubr.msk.f32.gmra.mrb[18].mxu0 %vm83_vm0, %v36_v41 }
  0x2d   :  { %1481 = vmatmul.mubr.msk.f32.gmra.mrb[18].mxu1 %vm83_vm0, %v68_v42  ;;  %1435 = vmatprep.mubr.msk.f32.mxu0 %vm83_vm0, %v37_v43 }
  0x2e   :  { %1483 = vmatprep.mubr.msk.f32.mxu1 %vm83_vm0, %v69_v44 }
  0x30   :  { %1436 = vmatmul.mubr.msk.f32.gmra.mrb[20].mxu0 %vm83_vm0, %v38_v45 }
  0x31   :  { %1484 = vmatmul.mubr.msk.f32.gmra.mrb[20].mxu1 %vm83_vm0, %v70_v46  ;;  %1438 = vmatprep.mubr.msk.f32.mxu0 %vm83_vm0, %v39_v47 }
  0x32   :  { %1486 = vmatprep.mubr.msk.f32.mxu1 %vm83_vm0, %v71_v48 }
  0x34   :  { %1439 = vmatmul.mubr.msk.f32.gmra.mrb[22].mxu0 %vm83_vm0, %v40_v49 }
  0x35   :  { %1487 = vmatmul.mubr.msk.f32.gmra.mrb[22].mxu1 %vm83_vm0, %v72_v50  ;;  %1441 = vmatprep.mubr.msk.f32.mxu0 %vm83_vm0, %v41_v51 }
  0x36   :  { %1489 = vmatprep.mubr.msk.f32.mxu1 %vm83_vm0, %v73_v52 }
  0x38   :  { %1442 = vmatmul.mubr.msk.f32.gmra.mrb[24].mxu0 %vm83_vm0, %v42_v53 }
  0x39   :  { %1490 = vmatmul.mubr.msk.f32.gmra.mrb[24].mxu1 %vm83_vm0, %v74_v54  ;;  %1444 = vmatprep.mubr.msk.f32.mxu0 %vm83_vm0, %v43_v55 }
  0x3a   :  { %1492 = vmatprep.mubr.msk.f32.mxu1 %vm83_vm0, %v75_v56 }
  0x3c   :  { %1445 = vmatmul.mubr.msk.f32.gmra.mrb[26].mxu0 %vm83_vm0, %v44_v57 }
  0x3d   :  { %1493 = vmatmul.mubr.msk.f32.gmra.mrb[26].mxu1 %vm83_vm0, %v76_v58  ;;  %1447 = vmatprep.mubr.msk.f32.mxu0 %vm83_vm0, %v45_v59 }
  0x3e   :  { %1495 = vmatprep.mubr.msk.f32.mxu1 %vm83_vm0, %v77_v60 }
  0x40   :  { %1448 = vmatmul.mubr.msk.f32.gmra.mrb[28].mxu0 %vm83_vm0, %v46_v61 }
  0x41   :  { %1496 = vmatmul.mubr.msk.f32.gmra.mrb[28].mxu1 %vm83_vm0, %v78_v62  ;;  %1450 = vmatprep.mubr.msk.f32.mxu0 %vm83_vm0, %v47_v63 }
  0x42   :  { %1498 = vmatprep.mubr.msk.f32.mxu1 %vm83_vm0, %v79_v0 }
  0x44   :  { %1451 = vmatmul.mubr.msk.f32.gmra.mrb[30].mxu0 %vm83_vm0, %v48_v1 }
  0x45   :  { %1499 = vmatmul.mubr.msk.f32.gmra.mrb[30].mxu1 %vm83_vm0, %v80_v2 }
  0xdb   :  { %v1407_v3 = vpop.f32.mrb[0].mxu0 }
  0xdc   :  { %v1455_v4 = vpop.f32.mrb[0].mxu1  ;;  %667 = vst.msk [vmem:[#allocation2 + $0x8] sm:$0xff] %vm665_vm1, %v1407_v3  ;;  %v342_v5 = vpop.f32.mrb[1].mxu0 }
  0xdd   :  { %699 = vst.msk [vmem:[#allocation2 + $0x108] sm:$0xff] %vm665_vm1, %v1455_v4  ;;  %v502_v6 = vpop.f32.mrb[1].mxu1  ;;  %666 = vst.msk [vmem:[#allocation2] sm:$0xff] %vm665_vm1, %v342_v5 }
  0xde   :  { %698 = vst.msk [vmem:[#allocation2 + $0x100] sm:$0xff] %vm665_vm1, %v502_v6 }
  0xdf   :  { %v1410_v7 = vpop.f32.mrb[2].mxu0 }
  0xe0   :  { %v1458_v8 = vpop.f32.mrb[2].mxu1  ;;  %669 = vst.msk [vmem:[#allocation2 + $0x18] sm:$0xff] %vm665_vm1, %v1410_v7  ;;  %v352_v9 = vpop.f32.mrb[3].mxu0 }
  0xe1   :  { %701 = vst.msk [vmem:[#allocation2 + $0x118] sm:$0xff] %vm665_vm1, %v1458_v8  ;;  %v512_v10 = vpop.f32.mrb[3].mxu1  ;;  %668 = vst.msk [vmem:[#allocation2 + $0x10] sm:$0xff] %vm665_vm1, %v352_v9 }
  0xe2   :  { %700 = vst.msk [vmem:[#allocation2 + $0x110] sm:$0xff] %vm665_vm1, %v512_v10 }
  0xe3   :  { %v931_v12 = vld [vmem:[#allocation2 + $0x8] sm:$0xff]  ;;  %v1413_v15 = vpop.f32.mrb[4].mxu0 }
  0xe4   :  { %v963_v14 = vld [vmem:[#allocation2 + $0x108] sm:$0xff]  ;;  %v1461_v16 = vpop.f32.mrb[4].mxu1  ;;  %v1002_v17 = vmul.f32 %v1803_v11, %v931_v12  ;;  %v930_v19 = vld [vmem:[#allocation2] sm:$0xff]  ;;  %671 = vst.msk [vmem:[#allocation2 + $0x28] sm:$0xff] %vm665_vm1, %v1413_v15  ;;  %v362_v21 = vpop.f32.mrb[5].mxu0 }
  0xe5   :  { %v1034_v18 = vmul.f32 %v1803_v11, %v963_v14  ;;  %v962_v20 = vld [vmem:[#allocation2 + $0x100] sm:$0xff]  ;;  %703 = vst.msk [vmem:[#allocation2 + $0x128] sm:$0xff] %vm665_vm1, %v1461_v16  ;;  %v522_v22 = vpop.f32.mrb[5].mxu1  ;;  %v1001_v23 = vmul.f32 %v1803_v11, %v930_v19  ;;  %670 = vst.msk [vmem:[#allocation2 + $0x20] sm:$0xff] %vm665_vm1, %v362_v21 }
  0xe6   :  { %v1033_v24 = vmul.f32 %v1803_v11, %v962_v20  ;;  %702 = vst.msk [vmem:[#allocation2 + $0x120] sm:$0xff] %vm665_vm1, %v522_v22  ;;  %v1073_v25 = vadd.f32 %v1810_v13, %v1002_v17 }
  0xe7   :  { %v1105_v26 = vadd.f32 %v1810_v13, %v1034_v18  ;;  %v1072_v27 = vadd.f32 %v1810_v13, %v1001_v23  ;;  %v933_v29 = vld [vmem:[#allocation2 + $0x18] sm:$0xff]  ;;  %v1416_v31 = vpop.f32.mrb[6].mxu0 }
  0xe8   :  { %v1104_v28 = vadd.f32 %v1810_v13, %v1033_v24  ;;  %v965_v30 = vld [vmem:[#allocation2 + $0x118] sm:$0xff]  ;;  %v1464_v32 = vpop.f32.mrb[6].mxu1  ;;  %v1137_v33 = vmax.f32 %v1073_v25, 0.0  ;;  %v1004_v35 = vmul.f32 %v1803_v11, %v933_v29  ;;  %v932_v37 = vld [vmem:[#allocation2 + $0x10] sm:$0xff]  ;;  %673 = vst.msk [vmem:[#allocation2 + $0x38] sm:$0xff] %vm665_vm1, %v1416_v31  ;;  %v372_v39 = vpop.f32.mrb[7].mxu0 }
  0xe9   :  { %v1169_v34 = vmax.f32 %v1105_v26, 0.0  ;;  %v1036_v36 = vmul.f32 %v1803_v11, %v965_v30  ;;  %v964_v38 = vld [vmem:[#allocation2 + $0x110] sm:$0xff]  ;;  %705 = vst.msk [vmem:[#allocation2 + $0x138] sm:$0xff] %vm665_vm1, %v1464_v32  ;;  %v532_v40 = vpop.f32.mrb[7].mxu1  ;;  %v1136_v41 = vmax.f32 %v1072_v27, 0.0  ;;  %v1003_v43 = vmul.f32 %v1803_v11, %v932_v37  ;;  %672 = vst.msk [vmem:[#allocation2 + $0x30] sm:$0xff] %vm665_vm1, %v372_v39 }
  0xea   :  { %v1168_v42 = vmax.f32 %v1104_v28, 0.0  ;;  %v1035_v44 = vmul.f32 %v1803_v11, %v964_v38  ;;  %704 = vst.msk [vmem:[#allocation2 + $0x130] sm:$0xff] %vm665_vm1, %v532_v40  ;;  %1202 = vst.msk [vmem:[%s2256_s4 + $0x8] sm:$0xff] %vm665_vm1, %v1137_v33  ;;  %v1075_v45 = vadd.f32 %v1810_v13, %v1004_v35 }
  0xeb   :  { %1234 = vst.msk [vmem:[%s2256_s4 + $0x108] sm:$0xff] %vm665_vm1, %v1169_v34  ;;  %v1107_v46 = vadd.f32 %v1810_v13, %v1036_v36  ;;  %1201 = vst.msk [vmem:[%s2256_s4] sm:$0xff] %vm665_vm1, %v1136_v41  ;;  %v1074_v47 = vadd.f32 %v1810_v13, %v1003_v43  ;;  %v935_v49 = vld [vmem:[#allocation2 + $0x28] sm:$0xff]  ;;  %v1419_v51 = vpop.f32.mrb[8].mxu0 }
  0xec   :  { %1233 = vst.msk [vmem:[%s2256_s4 + $0x100] sm:$0xff] %vm665_vm1, %v1168_v42  ;;  %v1106_v48 = vadd.f32 %v1810_v13, %v1035_v44  ;;  %v967_v50 = vld [vmem:[#allocation2 + $0x128] sm:$0xff]  ;;  %v1467_v52 = vpop.f32.mrb[8].mxu1  ;;  %v1139_v53 = vmax.f32 %v1075_v45, 0.0  ;;  %v1006_v55 = vmul.f32 %v1803_v11, %v935_v49  ;;  %v934_v57 = vld [vmem:[#allocation2 + $0x20] sm:$0xff]  ;;  %675 = vst.msk [vmem:[#allocation2 + $0x48] sm:$0xff] %vm665_vm1, %v1419_v51 }
  0xed   :  { %v1171_v54 = vmax.f32 %v1107_v46, 0.0  ;;  %v1038_v56 = vmul.f32 %v1803_v11, %v967_v50  ;;  %v966_v58 = vld [vmem:[#allocation2 + $0x120] sm:$0xff]  ;;  %707 = vst.msk [vmem:[#allocation2 + $0x148] sm:$0xff] %vm665_vm1, %v1467_v52  ;;  %v382_v59 = vpop.f32.mrb[9].mxu0  ;;  %v542_v60 = vpop.f32.mrb[9].mxu1  ;;  %v1138_v61 = vmax.f32 %v1074_v47, 0.0  ;;  %v1005_v63 = vmul.f32 %v1803_v11, %v934_v57 }
  0xee   :  { %v1170_v62 = vmax.f32 %v1106_v48, 0.0  ;;  %v1037_v0 = vmul.f32 %v1803_v11, %v966_v58  ;;  %674 = vst.msk [vmem:[#allocation2 + $0x40] sm:$0xff] %vm665_vm1, %v382_v59  ;;  %706 = vst.msk [vmem:[#allocation2 + $0x140] sm:$0xff] %vm665_vm1, %v542_v60  ;;  %v1077_v1 = vadd.f32 %v1810_v13, %v1006_v55 }
  0xef   :  { %1204 = vst.msk [vmem:[%s2256_s4 + $0x18] sm:$0xff] %vm665_vm1, %v1139_v53  ;;  %1236 = vst.msk [vmem:[%s2256_s4 + $0x118] sm:$0xff] %vm665_vm1, %v1171_v54  ;;  %v1109_v2 = vadd.f32 %v1810_v13, %v1038_v56  ;;  %v1076_v3 = vadd.f32 %v1810_v13, %v1005_v63  ;;  %v937_v5 = vld [vmem:[#allocation2 + $0x38] sm:$0xff]  ;;  %v1422_v7 = vpop.f32.mrb[10].mxu0 }
  0xf0   :  { %1203 = vst.msk [vmem:[%s2256_s4 + $0x10] sm:$0xff] %vm665_vm1, %v1138_v61  ;;  %1235 = vst.msk [vmem:[%s2256_s4 + $0x110] sm:$0xff] %vm665_vm1, %v1170_v62  ;;  %v1108_v4 = vadd.f32 %v1810_v13, %v1037_v0  ;;  %v969_v6 = vld [vmem:[#allocation2 + $0x138] sm:$0xff]  ;;  %v1470_v8 = vpop.f32.mrb[10].mxu1  ;;  %v1141_v9 = vmax.f32 %v1077_v1, 0.0  ;;  %v1008_v12 = vmul.f32 %v1803_v11, %v937_v5  ;;  %v936_v15 = vld [vmem:[#allocation2 + $0x30] sm:$0xff] }
  0xf1   :  { %v1173_v10 = vmax.f32 %v1109_v2, 0.0  ;;  %v1040_v14 = vmul.f32 %v1803_v11, %v969_v6  ;;  %v968_v16 = vld [vmem:[#allocation2 + $0x130] sm:$0xff]  ;;  %677 = vst.msk [vmem:[#allocation2 + $0x58] sm:$0xff] %vm665_vm1, %v1422_v7  ;;  %709 = vst.msk [vmem:[#allocation2 + $0x158] sm:$0xff] %vm665_vm1, %v1470_v8  ;;  %v392_v17 = vpop.f32.mrb[11].mxu0  ;;  %v552_v18 = vpop.f32.mrb[11].mxu1  ;;  %v1007_v21 = vmul.f32 %v1803_v11, %v936_v15 }
  0xf2   :  { %v1140_v19 = vmax.f32 %v1076_v3, 0.0  ;;  %v1172_v20 = vmax.f32 %v1108_v4, 0.0  ;;  %v1039_v22 = vmul.f32 %v1803_v11, %v968_v16  ;;  %676 = vst.msk [vmem:[#allocation2 + $0x50] sm:$0xff] %vm665_vm1, %v392_v17  ;;  %708 = vst.msk [vmem:[#allocation2 + $0x150] sm:$0xff] %vm665_vm1, %v552_v18  ;;  %v1079_v23 = vadd.f32 %v1810_v13, %v1008_v12 }
  0xf3   :  { %1206 = vst.msk [vmem:[%s2256_s4 + $0x28] sm:$0xff] %vm665_vm1, %v1141_v9  ;;  %1238 = vst.msk [vmem:[%s2256_s4 + $0x128] sm:$0xff] %vm665_vm1, %v1173_v10  ;;  %v1111_v24 = vadd.f32 %v1810_v13, %v1040_v14  ;;  %v1078_v25 = vadd.f32 %v1810_v13, %v1007_v21  ;;  %v939_v27 = vld [vmem:[#allocation2 + $0x48] sm:$0xff]  ;;  %v1425_v29 = vpop.f32.mrb[12].mxu0 }
  0xf4   :  { %1205 = vst.msk [vmem:[%s2256_s4 + $0x20] sm:$0xff] %vm665_vm1, %v1140_v19  ;;  %1237 = vst.msk [vmem:[%s2256_s4 + $0x120] sm:$0xff] %vm665_vm1, %v1172_v20  ;;  %v1110_v26 = vadd.f32 %v1810_v13, %v1039_v22  ;;  %v971_v28 = vld [vmem:[#allocation2 + $0x148] sm:$0xff]  ;;  %v1473_v30 = vpop.f32.mrb[12].mxu1  ;;  %v1143_v31 = vmax.f32 %v1079_v23, 0.0  ;;  %v1010_v33 = vmul.f32 %v1803_v11, %v939_v27  ;;  %v402_v37 = vpop.f32.mrb[13].mxu0 }
  0xf5   :  { %v1175_v32 = vmax.f32 %v1111_v24, 0.0  ;;  %v1042_v34 = vmul.f32 %v1803_v11, %v971_v28  ;;  %v938_v35 = vld [vmem:[#allocation2 + $0x40] sm:$0xff]  ;;  %679 = vst.msk [vmem:[#allocation2 + $0x68] sm:$0xff] %vm665_vm1, %v1425_v29  ;;  %711 = vst.msk [vmem:[#allocation2 + $0x168] sm:$0xff] %vm665_vm1, %v1473_v30  ;;  %v562_v38 = vpop.f32.mrb[13].mxu1  ;;  %v1142_v39 = vmax.f32 %v1078_v25, 0.0 }
  0xf6   :  { %v970_v36 = vld [vmem:[#allocation2 + $0x140] sm:$0xff]  ;;  %v1174_v40 = vmax.f32 %v1110_v26, 0.0  ;;  %v1009_v41 = vmul.f32 %v1803_v11, %v938_v35  ;;  %678 = vst.msk [vmem:[#allocation2 + $0x60] sm:$0xff] %vm665_vm1, %v402_v37  ;;  %710 = vst.msk [vmem:[#allocation2 + $0x160] sm:$0xff] %vm665_vm1, %v562_v38  ;;  %v1081_v43 = vadd.f32 %v1810_v13, %v1010_v33 }
  0xf7   :  { %v1041_v42 = vmul.f32 %v1803_v11, %v970_v36  ;;  %1208 = vst.msk [vmem:[%s2256_s4 + $0x38] sm:$0xff] %vm665_vm1, %v1143_v31  ;;  %1240 = vst.msk [vmem:[%s2256_s4 + $0x138] sm:$0xff] %vm665_vm1, %v1175_v32  ;;  %v1113_v44 = vadd.f32 %v1810_v13, %v1042_v34  ;;  %v1428_v49 = vpop.f32.mrb[14].mxu0 }
  0xf8   :  { %1207 = vst.msk [vmem:[%s2256_s4 + $0x30] sm:$0xff] %vm665_vm1, %v1142_v39  ;;  %1239 = vst.msk [vmem:[%s2256_s4 + $0x130] sm:$0xff] %vm665_vm1, %v1174_v40  ;;  %v1080_v45 = vadd.f32 %v1810_v13, %v1009_v41  ;;  %v941_v47 = vld [vmem:[#allocation2 + $0x58] sm:$0xff]  ;;  %v1476_v50 = vpop.f32.mrb[14].mxu1  ;;  %v1145_v51 = vmax.f32 %v1081_v43, 0.0  ;;  %v412_v57 = vpop.f32.mrb[15].mxu0 }
  0xf9   :  { %v1112_v46 = vadd.f32 %v1810_v13, %v1041_v42  ;;  %v973_v48 = vld [vmem:[#allocation2 + $0x158] sm:$0xff]  ;;  %v1177_v52 = vmax.f32 %v1113_v44, 0.0  ;;  %v1012_v53 = vmul.f32 %v1803_v11, %v941_v47  ;;  %v940_v55 = vld [vmem:[#allocation2 + $0x50] sm:$0xff]  ;;  %681 = vst.msk [vmem:[#allocation2 + $0x78] sm:$0xff] %vm665_vm1, %v1428_v49  ;;  %713 = vst.msk [vmem:[#allocation2 + $0x178] sm:$0xff] %vm665_vm1, %v1476_v50  ;;  %v572_v58 = vpop.f32.mrb[15].mxu1 }
  0xfa   :  { %v1044_v54 = vmul.f32 %v1803_v11, %v973_v48  ;;  %v972_v56 = vld [vmem:[#allocation2 + $0x150] sm:$0xff]  ;;  %v1144_v59 = vmax.f32 %v1080_v45, 0.0  ;;  %v1011_v61 = vmul.f32 %v1803_v11, %v940_v55  ;;  %680 = vst.msk [vmem:[#allocation2 + $0x70] sm:$0xff] %vm665_vm1, %v412_v57  ;;  %712 = vst.msk [vmem:[#allocation2 + $0x170] sm:$0xff] %vm665_vm1, %v572_v58 }
  0xfb   :  { %v1176_v60 = vmax.f32 %v1112_v46, 0.0  ;;  %v1043_v62 = vmul.f32 %v1803_v11, %v972_v56  ;;  %1210 = vst.msk [vmem:[%s2256_s4 + $0x48] sm:$0xff] %vm665_vm1, %v1145_v51  ;;  %1242 = vst.msk [vmem:[%s2256_s4 + $0x148] sm:$0xff] %vm665_vm1, %v1177_v52  ;;  %v1083_v63 = vadd.f32 %v1810_v13, %v1012_v53  ;;  %v1431_v5 = vpop.f32.mrb[16].mxu0 }
  0xfc   :  { %v1115_v0 = vadd.f32 %v1810_v13, %v1044_v54  ;;  %1209 = vst.msk [vmem:[%s2256_s4 + $0x40] sm:$0xff] %vm665_vm1, %v1144_v59  ;;  %v1082_v1 = vadd.f32 %v1810_v13, %v1011_v61  ;;  %v943_v3 = vld [vmem:[#allocation2 + $0x68] sm:$0xff]  ;;  %v1479_v6 = vpop.f32.mrb[16].mxu1  ;;  %683 = vst.msk [vmem:[#allocation2 + $0x88] sm:$0xff] %vm665_vm1, %v1431_v5  ;;  %v422_v15 = vpop.f32.mrb[17].mxu0 }
  0xfd   :  { %1241 = vst.msk [vmem:[%s2256_s4 + $0x140] sm:$0xff] %vm665_vm1, %v1176_v60  ;;  %v1114_v2 = vadd.f32 %v1810_v13, %v1043_v62  ;;  %v975_v4 = vld [vmem:[#allocation2 + $0x168] sm:$0xff]  ;;  %v1147_v7 = vmax.f32 %v1083_v63, 0.0  ;;  %v1014_v9 = vmul.f32 %v1803_v11, %v943_v3  ;;  %v942_v12 = vld [vmem:[#allocation2 + $0x60] sm:$0xff]  ;;  %715 = vst.msk [vmem:[#allocation2 + $0x188] sm:$0xff] %vm665_vm1, %v1479_v6  ;;  %v582_v16 = vpop.f32.mrb[17].mxu1 }
  0xfe   :  { %v1179_v8 = vmax.f32 %v1115_v0, 0.0  ;;  %v1046_v10 = vmul.f32 %v1803_v11, %v975_v4  ;;  %v974_v14 = vld [vmem:[#allocation2 + $0x160] sm:$0xff]  ;;  %v1146_v17 = vmax.f32 %v1082_v1, 0.0  ;;  %v1013_v19 = vmul.f32 %v1803_v11, %v942_v12  ;;  %682 = vst.msk [vmem:[#allocation2 + $0x80] sm:$0xff] %vm665_vm1, %v422_v15  ;;  %714 = vst.msk [vmem:[#allocation2 + $0x180] sm:$0xff] %vm665_vm1, %v582_v16 }
  0xff   :  { %v1178_v18 = vmax.f32 %v1114_v2, 0.0  ;;  %v1045_v20 = vmul.f32 %v1803_v11, %v974_v14  ;;  %1212 = vst.msk [vmem:[%s2256_s4 + $0x58] sm:$0xff] %vm665_vm1, %v1147_v7  ;;  %v1085_v21 = vadd.f32 %v1810_v13, %v1014_v9  ;;  %v1434_v27 = vpop.f32.mrb[18].mxu0 }
 0x100   :  { %1244 = vst.msk [vmem:[%s2256_s4 + $0x158] sm:$0xff] %vm665_vm1, %v1179_v8  ;;  %v1117_v22 = vadd.f32 %v1810_v13, %v1046_v10  ;;  %1211 = vst.msk [vmem:[%s2256_s4 + $0x50] sm:$0xff] %vm665_vm1, %v1146_v17  ;;  %v1084_v23 = vadd.f32 %v1810_v13, %v1013_v19  ;;  %v945_v25 = vld [vmem:[#allocation2 + $0x78] sm:$0xff]  ;;  %v1482_v28 = vpop.f32.mrb[18].mxu1  ;;  %v432_v35 = vpop.f32.mrb[19].mxu0 }
 0x101   :  { %1243 = vst.msk [vmem:[%s2256_s4 + $0x150] sm:$0xff] %vm665_vm1, %v1178_v18  ;;  %v1116_v24 = vadd.f32 %v1810_v13, %v1045_v20  ;;  %v977_v26 = vld [vmem:[#allocation2 + $0x178] sm:$0xff]  ;;  %v1149_v29 = vmax.f32 %v1085_v21, 0.0  ;;  %v1016_v31 = vmul.f32 %v1803_v11, %v945_v25  ;;  %v944_v33 = vld [vmem:[#allocation2 + $0x70] sm:$0xff]  ;;  %685 = vst.msk [vmem:[#allocation2 + $0x98] sm:$0xff] %vm665_vm1, %v1434_v27  ;;  %v592_v36 = vpop.f32.mrb[19].mxu1 }
 0x102   :  { %v1181_v30 = vmax.f32 %v1117_v22, 0.0  ;;  %v1048_v32 = vmul.f32 %v1803_v11, %v977_v26  ;;  %v976_v34 = vld [vmem:[#allocation2 + $0x170] sm:$0xff]  ;;  %717 = vst.msk [vmem:[#allocation2 + $0x198] sm:$0xff] %vm665_vm1, %v1482_v28  ;;  %v1148_v37 = vmax.f32 %v1084_v23, 0.0  ;;  %v1015_v39 = vmul.f32 %v1803_v11, %v944_v33  ;;  %684 = vst.msk [vmem:[#allocation2 + $0x90] sm:$0xff] %vm665_vm1, %v432_v35 }
 0x103   :  { %v1180_v38 = vmax.f32 %v1116_v24, 0.0  ;;  %v1047_v40 = vmul.f32 %v1803_v11, %v976_v34  ;;  %716 = vst.msk [vmem:[#allocation2 + $0x190] sm:$0xff] %vm665_vm1, %v592_v36  ;;  %1214 = vst.msk [vmem:[%s2256_s4 + $0x68] sm:$0xff] %vm665_vm1, %v1149_v29  ;;  %v1087_v41 = vadd.f32 %v1810_v13, %v1016_v31  ;;  %v947_v45 = vld [vmem:[#allocation2 + $0x88] sm:$0xff]  ;;  %v1437_v47 = vpop.f32.mrb[20].mxu0 }
 0x104   :  { %1246 = vst.msk [vmem:[%s2256_s4 + $0x168] sm:$0xff] %vm665_vm1, %v1181_v30  ;;  %v1119_v42 = vadd.f32 %v1810_v13, %v1048_v32  ;;  %1213 = vst.msk [vmem:[%s2256_s4 + $0x60] sm:$0xff] %vm665_vm1, %v1148_v37  ;;  %v1086_v43 = vadd.f32 %v1810_v13, %v1015_v39  ;;  %v979_v46 = vld [vmem:[#allocation2 + $0x188] sm:$0xff]  ;;  %v1485_v48 = vpop.f32.mrb[20].mxu1  ;;  %v1018_v51 = vmul.f32 %v1803_v11, %v947_v45  ;;  %v442_v55 = vpop.f32.mrb[21].mxu0 }
 0x105   :  { %1245 = vst.msk [vmem:[%s2256_s4 + $0x160] sm:$0xff] %vm665_vm1, %v1180_v38  ;;  %v1118_v44 = vadd.f32 %v1810_v13, %v1047_v40  ;;  %v1151_v49 = vmax.f32 %v1087_v41, 0.0  ;;  %v1050_v52 = vmul.f32 %v1803_v11, %v979_v46  ;;  %v946_v53 = vld [vmem:[#allocation2 + $0x80] sm:$0xff]  ;;  %687 = vst.msk [vmem:[#allocation2 + $0xa8] sm:$0xff] %vm665_vm1, %v1437_v47  ;;  %v602_v56 = vpop.f32.mrb[21].mxu1 }
 0x106   :  { %v1183_v50 = vmax.f32 %v1119_v42, 0.0  ;;  %v978_v54 = vld [vmem:[#allocation2 + $0x180] sm:$0xff]  ;;  %719 = vst.msk [vmem:[#allocation2 + $0x1a8] sm:$0xff] %vm665_vm1, %v1485_v48  ;;  %v1150_v57 = vmax.f32 %v1086_v43, 0.0  ;;  %v1017_v59 = vmul.f32 %v1803_v11, %v946_v53  ;;  %686 = vst.msk [vmem:[#allocation2 + $0xa0] sm:$0xff] %vm665_vm1, %v442_v55  ;;  %v1089_v61 = vadd.f32 %v1810_v13, %v1018_v51 }
 0x107   :  { %v1182_v58 = vmax.f32 %v1118_v44, 0.0  ;;  %v1049_v60 = vmul.f32 %v1803_v11, %v978_v54  ;;  %718 = vst.msk [vmem:[#allocation2 + $0x1a0] sm:$0xff] %vm665_vm1, %v602_v56  ;;  %1216 = vst.msk [vmem:[%s2256_s4 + $0x78] sm:$0xff] %vm665_vm1, %v1151_v49  ;;  %v1121_v62 = vadd.f32 %v1810_v13, %v1050_v52  ;;  %v1440_v3 = vpop.f32.mrb[22].mxu0 }
 0x108   :  { %1248 = vst.msk [vmem:[%s2256_s4 + $0x178] sm:$0xff] %vm665_vm1, %v1183_v50  ;;  %1215 = vst.msk [vmem:[%s2256_s4 + $0x70] sm:$0xff] %vm665_vm1, %v1150_v57  ;;  %v1088_v63 = vadd.f32 %v1810_v13, %v1017_v59  ;;  %v949_v1 = vld [vmem:[#allocation2 + $0x98] sm:$0xff]  ;;  %v1488_v4 = vpop.f32.mrb[22].mxu1  ;;  %v1153_v5 = vmax.f32 %v1089_v61, 0.0  ;;  %v452_v12 = vpop.f32.mrb[23].mxu0 }
 0x109   :  { %1247 = vst.msk [vmem:[%s2256_s4 + $0x170] sm:$0xff] %vm665_vm1, %v1182_v58  ;;  %v1120_v0 = vadd.f32 %v1810_v13, %v1049_v60  ;;  %v981_v2 = vld [vmem:[#allocation2 + $0x198] sm:$0xff]  ;;  %v1185_v6 = vmax.f32 %v1121_v62, 0.0  ;;  %v1020_v7 = vmul.f32 %v1803_v11, %v949_v1  ;;  %v948_v9 = vld [vmem:[#allocation2 + $0x90] sm:$0xff]  ;;  %689 = vst.msk [vmem:[#allocation2 + $0xb8] sm:$0xff] %vm665_vm1, %v1440_v3  ;;  %v612_v14 = vpop.f32.mrb[23].mxu1 }
 0x10a   :  { %v1052_v8 = vmul.f32 %v1803_v11, %v981_v2  ;;  %v980_v10 = vld [vmem:[#allocation2 + $0x190] sm:$0xff]  ;;  %721 = vst.msk [vmem:[#allocation2 + $0x1b8] sm:$0xff] %vm665_vm1, %v1488_v4  ;;  %v1152_v15 = vmax.f32 %v1088_v63, 0.0  ;;  %v1019_v17 = vmul.f32 %v1803_v11, %v948_v9  ;;  %688 = vst.msk [vmem:[#allocation2 + $0xb0] sm:$0xff] %vm665_vm1, %v452_v12 }
 0x10b   :  { %v1184_v16 = vmax.f32 %v1120_v0, 0.0  ;;  %v1051_v18 = vmul.f32 %v1803_v11, %v980_v10  ;;  %720 = vst.msk [vmem:[#allocation2 + $0x1b0] sm:$0xff] %vm665_vm1, %v612_v14  ;;  %1218 = vst.msk [vmem:[%s2256_s4 + $0x88] sm:$0xff] %vm665_vm1, %v1153_v5  ;;  %v1091_v19 = vadd.f32 %v1810_v13, %v1020_v7  ;;  %v1443_v25 = vpop.f32.mrb[24].mxu0 }
 0x10c   :  { %1250 = vst.msk [vmem:[%s2256_s4 + $0x188] sm:$0xff] %vm665_vm1, %v1185_v6  ;;  %v1123_v20 = vadd.f32 %v1810_v13, %v1052_v8  ;;  %1217 = vst.msk [vmem:[%s2256_s4 + $0x80] sm:$0xff] %vm665_vm1, %v1152_v15  ;;  %v1090_v21 = vadd.f32 %v1810_v13, %v1019_v17  ;;  %v951_v23 = vld [vmem:[#allocation2 + $0xa8] sm:$0xff]  ;;  %v1491_v26 = vpop.f32.mrb[24].mxu1  ;;  %v462_v33 = vpop.f32.mrb[25].mxu0 }
 0x10d   :  { %1249 = vst.msk [vmem:[%s2256_s4 + $0x180] sm:$0xff] %vm665_vm1, %v1184_v16  ;;  %v1122_v22 = vadd.f32 %v1810_v13, %v1051_v18  ;;  %v983_v24 = vld [vmem:[#allocation2 + $0x1a8] sm:$0xff]  ;;  %v1155_v27 = vmax.f32 %v1091_v19, 0.0  ;;  %v1022_v29 = vmul.f32 %v1803_v11, %v951_v23  ;;  %v950_v31 = vld [vmem:[#allocation2 + $0xa0] sm:$0xff]  ;;  %691 = vst.msk [vmem:[#allocation2 + $0xc8] sm:$0xff] %vm665_vm1, %v1443_v25  ;;  %v622_v34 = vpop.f32.mrb[25].mxu1 }
 0x10e   :  { %v1187_v28 = vmax.f32 %v1123_v20, 0.0  ;;  %v1054_v30 = vmul.f32 %v1803_v11, %v983_v24  ;;  %v982_v32 = vld [vmem:[#allocation2 + $0x1a0] sm:$0xff]  ;;  %723 = vst.msk [vmem:[#allocation2 + $0x1c8] sm:$0xff] %vm665_vm1, %v1491_v26  ;;  %v1154_v35 = vmax.f32 %v1090_v21, 0.0  ;;  %v1021_v37 = vmul.f32 %v1803_v11, %v950_v31  ;;  %690 = vst.msk [vmem:[#allocation2 + $0xc0] sm:$0xff] %vm665_vm1, %v462_v33 }
 0x10f   :  { %v1186_v36 = vmax.f32 %v1122_v22, 0.0  ;;  %v1053_v38 = vmul.f32 %v1803_v11, %v982_v32  ;;  %722 = vst.msk [vmem:[#allocation2 + $0x1c0] sm:$0xff] %vm665_vm1, %v622_v34  ;;  %1220 = vst.msk [vmem:[%s2256_s4 + $0x98] sm:$0xff] %vm665_vm1, %v1155_v27  ;;  %v1093_v39 = vadd.f32 %v1810_v13, %v1022_v29  ;;  %v1446_v45 = vpop.f32.mrb[26].mxu0 }
 0x110   :  { %1252 = vst.msk [vmem:[%s2256_s4 + $0x198] sm:$0xff] %vm665_vm1, %v1187_v28  ;;  %v1125_v40 = vadd.f32 %v1810_v13, %v1054_v30  ;;  %1219 = vst.msk [vmem:[%s2256_s4 + $0x90] sm:$0xff] %vm665_vm1, %v1154_v35  ;;  %v1092_v41 = vadd.f32 %v1810_v13, %v1021_v37  ;;  %v953_v43 = vld [vmem:[#allocation2 + $0xb8] sm:$0xff]  ;;  %v1494_v46 = vpop.f32.mrb[26].mxu1  ;;  %v472_v53 = vpop.f32.mrb[27].mxu0 }
 0x111   :  { %1251 = vst.msk [vmem:[%s2256_s4 + $0x190] sm:$0xff] %vm665_vm1, %v1186_v36  ;;  %v1124_v42 = vadd.f32 %v1810_v13, %v1053_v38  ;;  %v985_v44 = vld [vmem:[#allocation2 + $0x1b8] sm:$0xff]  ;;  %v1157_v47 = vmax.f32 %v1093_v39, 0.0  ;;  %v1024_v49 = vmul.f32 %v1803_v11, %v953_v43  ;;  %v952_v51 = vld [vmem:[#allocation2 + $0xb0] sm:$0xff]  ;;  %693 = vst.msk [vmem:[#allocation2 + $0xd8] sm:$0xff] %vm665_vm1, %v1446_v45  ;;  %v632_v54 = vpop.f32.mrb[27].mxu1 }
 0x112   :  { %v1189_v48 = vmax.f32 %v1125_v40, 0.0  ;;  %v1056_v50 = vmul.f32 %v1803_v11, %v985_v44  ;;  %v984_v52 = vld [vmem:[#allocation2 + $0x1b0] sm:$0xff]  ;;  %725 = vst.msk [vmem:[#allocation2 + $0x1d8] sm:$0xff] %vm665_vm1, %v1494_v46  ;;  %v1156_v55 = vmax.f32 %v1092_v41, 0.0  ;;  %v1023_v57 = vmul.f32 %v1803_v11, %v952_v51  ;;  %692 = vst.msk [vmem:[#allocation2 + $0xd0] sm:$0xff] %vm665_vm1, %v472_v53 }
 0x113   :  { %v1188_v56 = vmax.f32 %v1124_v42, 0.0  ;;  %v1055_v58 = vmul.f32 %v1803_v11, %v984_v52  ;;  %724 = vst.msk [vmem:[#allocation2 + $0x1d0] sm:$0xff] %vm665_vm1, %v632_v54  ;;  %1222 = vst.msk [vmem:[%s2256_s4 + $0xa8] sm:$0xff] %vm665_vm1, %v1157_v47  ;;  %v1095_v59 = vadd.f32 %v1810_v13, %v1024_v49  ;;  %v1449_v1 = vpop.f32.mrb[28].mxu0 }
 0x114   :  { %1254 = vst.msk [vmem:[%s2256_s4 + $0x1a8] sm:$0xff] %vm665_vm1, %v1189_v48  ;;  %v1127_v60 = vadd.f32 %v1810_v13, %v1056_v50  ;;  %1221 = vst.msk [vmem:[%s2256_s4 + $0xa0] sm:$0xff] %vm665_vm1, %v1156_v55  ;;  %v1094_v61 = vadd.f32 %v1810_v13, %v1023_v57  ;;  %v955_v63 = vld [vmem:[#allocation2 + $0xc8] sm:$0xff]  ;;  %v1497_v2 = vpop.f32.mrb[28].mxu1  ;;  %v482_v9 = vpop.f32.mrb[29].mxu0 }
 0x115   :  { %1253 = vst.msk [vmem:[%s2256_s4 + $0x1a0] sm:$0xff] %vm665_vm1, %v1188_v56  ;;  %v1126_v62 = vadd.f32 %v1810_v13, %v1055_v58  ;;  %v987_v0 = vld [vmem:[#allocation2 + $0x1c8] sm:$0xff]  ;;  %v1159_v3 = vmax.f32 %v1095_v59, 0.0  ;;  %v1026_v5 = vmul.f32 %v1803_v11, %v955_v63  ;;  %v954_v7 = vld [vmem:[#allocation2 + $0xc0] sm:$0xff]  ;;  %695 = vst.msk [vmem:[#allocation2 + $0xe8] sm:$0xff] %vm665_vm1, %v1449_v1  ;;  %v642_v10 = vpop.f32.mrb[29].mxu1 }
 0x116   :  { %v1191_v4 = vmax.f32 %v1127_v60, 0.0  ;;  %v1058_v6 = vmul.f32 %v1803_v11, %v987_v0  ;;  %v986_v8 = vld [vmem:[#allocation2 + $0x1c0] sm:$0xff]  ;;  %727 = vst.msk [vmem:[#allocation2 + $0x1e8] sm:$0xff] %vm665_vm1, %v1497_v2  ;;  %v1158_v12 = vmax.f32 %v1094_v61, 0.0  ;;  %v1025_v15 = vmul.f32 %v1803_v11, %v954_v7  ;;  %694 = vst.msk [vmem:[#allocation2 + $0xe0] sm:$0xff] %vm665_vm1, %v482_v9 }
 0x117   :  { %v1190_v14 = vmax.f32 %v1126_v62, 0.0  ;;  %v1057_v16 = vmul.f32 %v1803_v11, %v986_v8  ;;  %726 = vst.msk [vmem:[#allocation2 + $0x1e0] sm:$0xff] %vm665_vm1, %v642_v10  ;;  %1224 = vst.msk [vmem:[%s2256_s4 + $0xb8] sm:$0xff] %vm665_vm1, %v1159_v3  ;;  %v1097_v17 = vadd.f32 %v1810_v13, %v1026_v5  ;;  %v1452_v23 = vpop.f32.mrb[30].mxu0 }
 0x118   :  { %1256 = vst.msk [vmem:[%s2256_s4 + $0x1b8] sm:$0xff] %vm665_vm1, %v1191_v4  ;;  %v1129_v18 = vadd.f32 %v1810_v13, %v1058_v6  ;;  %1223 = vst.msk [vmem:[%s2256_s4 + $0xb0] sm:$0xff] %vm665_vm1, %v1158_v12  ;;  %v1096_v19 = vadd.f32 %v1810_v13, %v1025_v15  ;;  %v957_v21 = vld [vmem:[#allocation2 + $0xd8] sm:$0xff]  ;;  %v1500_v24 = vpop.f32.mrb[30].mxu1  ;;  %v492_v31 = vpop.f32.mrb[31].mxu0 }
 0x119   :  { %1255 = vst.msk [vmem:[%s2256_s4 + $0x1b0] sm:$0xff] %vm665_vm1, %v1190_v14  ;;  %v1128_v20 = vadd.f32 %v1810_v13, %v1057_v16  ;;  %v989_v22 = vld [vmem:[#allocation2 + $0x1d8] sm:$0xff]  ;;  %v1161_v25 = vmax.f32 %v1097_v17, 0.0  ;;  %v1028_v27 = vmul.f32 %v1803_v11, %v957_v21  ;;  %v956_v29 = vld [vmem:[#allocation2 + $0xd0] sm:$0xff]  ;;  %697 = vst.msk [vmem:[#allocation2 + $0xf8] sm:$0xff] %vm665_vm1, %v1452_v23  ;;  %v652_v32 = vpop.f32.mrb[31].mxu1 }
 0x11a   :  { %v1193_v26 = vmax.f32 %v1129_v18, 0.0  ;;  %v1060_v28 = vmul.f32 %v1803_v11, %v989_v22  ;;  %v988_v30 = vld [vmem:[#allocation2 + $0x1d0] sm:$0xff]  ;;  %729 = vst.msk [vmem:[#allocation2 + $0x1f8] sm:$0xff] %vm665_vm1, %v1500_v24  ;;  %v1160_v33 = vmax.f32 %v1096_v19, 0.0  ;;  %v1027_v35 = vmul.f32 %v1803_v11, %v956_v29  ;;  %696 = vst.msk [vmem:[#allocation2 + $0xf0] sm:$0xff] %vm665_vm1, %v492_v31 }
 0x11b   :  { %v1192_v34 = vmax.f32 %v1128_v20, 0.0  ;;  %v1059_v36 = vmul.f32 %v1803_v11, %v988_v30  ;;  %728 = vst.msk [vmem:[#allocation2 + $0x1f0] sm:$0xff] %vm665_vm1, %v652_v32  ;;  %1226 = vst.msk [vmem:[%s2256_s4 + $0xc8] sm:$0xff] %vm665_vm1, %v1161_v25  ;;  %v1099_v37 = vadd.f32 %v1810_v13, %v1028_v27 }
 0x11c   :  { %1258 = vst.msk [vmem:[%s2256_s4 + $0x1c8] sm:$0xff] %vm665_vm1, %v1193_v26  ;;  %v1131_v38 = vadd.f32 %v1810_v13, %v1060_v28  ;;  %1225 = vst.msk [vmem:[%s2256_s4 + $0xc0] sm:$0xff] %vm665_vm1, %v1160_v33  ;;  %v1098_v39 = vadd.f32 %v1810_v13, %v1027_v35  ;;  %v959_v41 = vld [vmem:[#allocation2 + $0xe8] sm:$0xff] }
 0x11d   :  { %1257 = vst.msk [vmem:[%s2256_s4 + $0x1c0] sm:$0xff] %vm665_vm1, %v1192_v34  ;;  %v1130_v40 = vadd.f32 %v1810_v13, %v1059_v36  ;;  %v991_v42 = vld [vmem:[#allocation2 + $0x1e8] sm:$0xff]  ;;  %v1163_v43 = vmax.f32 %v1099_v37, 0.0  ;;  %v1030_v45 = vmul.f32 %v1803_v11, %v959_v41  ;;  %v958_v47 = vld [vmem:[#allocation2 + $0xe0] sm:$0xff] }
 0x11e   :  { %v1195_v44 = vmax.f32 %v1131_v38, 0.0  ;;  %v1062_v46 = vmul.f32 %v1803_v11, %v991_v42  ;;  %v990_v48 = vld [vmem:[#allocation2 + $0x1e0] sm:$0xff]  ;;  %v1162_v49 = vmax.f32 %v1098_v39, 0.0  ;;  %v1029_v51 = vmul.f32 %v1803_v11, %v958_v47 }
 0x11f   :  { %v1194_v50 = vmax.f32 %v1130_v40, 0.0  ;;  %v1061_v52 = vmul.f32 %v1803_v11, %v990_v48  ;;  %1228 = vst.msk [vmem:[%s2256_s4 + $0xd8] sm:$0xff] %vm665_vm1, %v1163_v43  ;;  %v1101_v53 = vadd.f32 %v1810_v13, %v1030_v45 }
 0x120   :  { %1260 = vst.msk [vmem:[%s2256_s4 + $0x1d8] sm:$0xff] %vm665_vm1, %v1195_v44  ;;  %v1133_v54 = vadd.f32 %v1810_v13, %v1062_v46  ;;  %1227 = vst.msk [vmem:[%s2256_s4 + $0xd0] sm:$0xff] %vm665_vm1, %v1162_v49  ;;  %v1100_v55 = vadd.f32 %v1810_v13, %v1029_v51  ;;  %v961_v57 = vld [vmem:[#allocation2 + $0xf8] sm:$0xff] }
 0x121   :  { %1259 = vst.msk [vmem:[%s2256_s4 + $0x1d0] sm:$0xff] %vm665_vm1, %v1194_v50  ;;  %v1132_v56 = vadd.f32 %v1810_v13, %v1061_v52  ;;  %v993_v58 = vld [vmem:[#allocation2 + $0x1f8] sm:$0xff]  ;;  %v1165_v59 = vmax.f32 %v1101_v53, 0.0  ;;  %v1032_v61 = vmul.f32 %v1803_v11, %v961_v57  ;;  %v960_v63 = vld [vmem:[#allocation2 + $0xf0] sm:$0xff] }
 0x122   :  { %v1197_v60 = vmax.f32 %v1133_v54, 0.0  ;;  %v1064_v62 = vmul.f32 %v1803_v11, %v993_v58  ;;  %v992_v0 = vld [vmem:[#allocation2 + $0x1f0] sm:$0xff]  ;;  %v1164_v1 = vmax.f32 %v1100_v55, 0.0  ;;  %v1031_v3 = vmul.f32 %v1803_v11, %v960_v63 }
 0x123   :  { %v1196_v2 = vmax.f32 %v1132_v56, 0.0  ;;  %v1063_v4 = vmul.f32 %v1803_v11, %v992_v0  ;;  %1230 = vst.msk [vmem:[%s2256_s4 + $0xe8] sm:$0xff] %vm665_vm1, %v1165_v59  ;;  %v1103_v5 = vadd.f32 %v1810_v13, %v1032_v61 }
 0x124   :  { %1262 = vst.msk [vmem:[%s2256_s4 + $0x1e8] sm:$0xff] %vm665_vm1, %v1197_v60  ;;  %v1135_v6 = vadd.f32 %v1810_v13, %v1064_v62  ;;  %1229 = vst.msk [vmem:[%s2256_s4 + $0xe0] sm:$0xff] %vm665_vm1, %v1164_v1  ;;  %v1102_v11 = vadd.f32 %v1810_v13, %v1031_v3 }
 0x125   :  { %1261 = vst.msk [vmem:[%s2256_s4 + $0x1e0] sm:$0xff] %vm665_vm1, %v1196_v2  ;;  %v1134_v7 = vadd.f32 %v1810_v13, %v1063_v4  ;;  %v1167_v8 = vmax.f32 %v1103_v5, 0.0 }
 0x126   :  { %v1199_v9 = vmax.f32 %v1135_v6, 0.0  ;;  %v1166_v10 = vmax.f32 %v1102_v11, 0.0 }
 0x127   :  { %v1198_v12 = vmax.f32 %v1134_v7, 0.0  ;;  %1232 = vst.msk [vmem:[%s2256_s4 + $0xf8] sm:$0xff] %vm665_vm1, %v1167_v8 }
 0x128   :  { %1264 = vst.msk [vmem:[%s2256_s4 + $0x1f8] sm:$0xff] %vm665_vm1, %v1199_v9  ;;  %1231 = vst.msk [vmem:[%s2256_s4 + $0xf0] sm:$0xff] %vm665_vm1, %v1166_v10 }
 0x129   :  { %1263 = vst.msk [vmem:[%s2256_s4 + $0x1f0] sm:$0xff] %vm665_vm1, %v1198_v12 }

</bundles_post_ra>
